<compile_context>
chip_gen: v6e
topology: v6e:2x2x1
jax: 0.10.0
libtpu: 0.0.40
codegen_flags: <defaults>
</compile_context>

<pallas_src>
import jax
import jax.numpy as jnp
from jax.experimental import pallas as pl
from jax.experimental.pallas import tpu as pltpu

# TODO(synk): DDP._active_ddp_module bookkeeping / bucket_bytes_cap have no
# compute semantics and are intentionally not modeled.

_LANE = 128
_SUBLANE = 8


def _round_up(n, m):
    return (n + m - 1) // m * m


def fake_ddp_mlp_kernel(x_ref,
                        w1_ref, b1_ref,
                        w2_ref, b2_ref,
                        w3_ref, b3_ref,
                        w4_ref, b4_ref,
                        o_ref):
    """Fused 4x (Linear + ReLU) on one batch tile.  Weights stay VMEM-resident."""
    h = x_ref[...]
    for w_ref, b_ref in ((w1_ref, b1_ref), (w2_ref, b2_ref),
                         (w3_ref, b3_ref), (w4_ref, b4_ref)):
        h = jnp.dot(h, w_ref[...], preferred_element_type=jnp.float32) + b_ref[...]
        h = jnp.maximum(h, 0.0)
    o_ref[...] = h.astype(o_ref.dtype)


def prepare_params(params, num_layers=4):
    """One-time parameter prep (NOT on the per-call hot path).

    * Transposes PyTorch-convention (out, in) weights to (in, out) so the
      kernel does lane-dense x @ W with no in-kernel transpose.
    * Zero-pads each layer's output features up to a multiple of 128 lanes
      (and the next layer's matching input rows), so every matmul output and
      the final store are lane-dense.  Padded columns/rows are zero => no
      numeric effect.
    * Lifts biases to (1, out_padded) rows for simple broadcasting.

    Returns (flat_args, true_out_features).
    """
    flat = []
    extra_in = 0  # zero rows appended to this layer's (in, out) weight
    out_f = 0
    for i in range(1, num_layers + 1):
        w = jnp.asarray(params[f"w{i}"], jnp.float32)   # (out, in)
        b = jnp.asarray(params[f"b{i}"], jnp.float32)   # (out,)
        out_f = w.shape[0]
        out_pad = _round_up(out_f, _LANE) - out_f
        wt = jnp.pad(w.T, ((0, extra_in), (0, out_pad)))          # (in+pad, out+pad)
        bt = jnp.pad(b, (0, out_pad)).reshape(1, -1)              # (1, out+pad)
        flat.extend((wt, bt))
        extra_in = out_pad
    return tuple(flat), out_f


def fake_ddp_forward(x, flat_params, out_features, *, batch_tile=256):
    """FakeDDP(ToyModel).forward(x): one fused pallas_call on the hot path.

    x: (B, in_feat) float32
    flat_params: output of prepare_params()
    """
    B, in_feat = x.shape
    out_pad = flat_params[-2].shape[1]  # lane-dense (128-multiple) output width

    # Batch tiling: a single tile for small B, otherwise a 1-D "parallel" grid
    # over batch tiles (pipelines x/o DMA against MXU work, megacore-shardable
    # on v7x).  TB=256 rows keeps the working set small enough for v7x VMEM.
    TB = _round_up(B, _SUBLANE) if B <= batch_tile else batch_tile
    B_pad = _round_up(B, TB)
    if B_pad != B:
        x = jnp.pad(x, ((0, B_pad - B), (0, 0)))

    resident = pl.BlockSpec(memory_space=pltpu.MemorySpace.VMEM)  # whole array, VMEM-resident

    out = pl.pallas_call(
        fake_ddp_mlp_kernel,
        out_shape=jax.ShapeDtypeStruct((B_pad, out_pad), x.dtype),
        grid=(B_pad // TB,),
        in_specs=[pl.BlockSpec((TB, in_feat), lambda i: (i, 0))]
                 + [resident] * len(flat_params),
        out_specs=pl.BlockSpec((TB, out_pad), lambda i: (i, 0)),
        compiler_params=pltpu.CompilerParams(
            dimension_semantics=("parallel",)),
    )(x, *flat_params)

    return out[:B, :out_features]


def init_params(key, in_feat, hidden_feat, out_feat):
    """Deterministic synthetic nn.Linear-style parameters (PyTorch convention)."""
    dims = [(hidden_feat, in_feat),
            (hidden_feat, hidden_feat),
            (hidden_feat, hidden_feat),
            (out_feat, hidden_feat)]
    params = {}
    for i, (fan_out, fan_in) in enumerate(dims, start=1):
        key, kw, kb = jax.random.split(key, 3)
        bound = 1.0 / jnp.sqrt(fan_in)
        params[f"w{i}"] = jax.random.uniform(
            kw, (fan_out, fan_in), jnp.float32, -bound, bound)
        params[f"b{i}"] = jax.random.uniform(
            kb, (fan_out,), jnp.float32, -bound, bound)
    return params


def reference_forward(x, params):
    h = x
    for i in range(1, 5):
        h = jnp.maximum(h @ params[f"w{i}"].T + params[f"b{i}"], 0.0)
    return h


if __name__ == "__main__":
    # Small shapes consistent with ToyModel(in_feat, hidden_feat, out_feat).
    B, IN_FEAT, HIDDEN, OUT_FEAT = 8, 32, 128, 32

    key = jax.random.PRNGKey(0)
    key, kx = jax.random.split(key)
    x = jax.random.normal(kx, (B, IN_FEAT), dtype=jnp.float32)
    params = init_params(key, IN_FEAT, HIDDEN, OUT_FEAT)

    # One-time prep (transpose + lane padding), off the per-call hot path.
    flat_params, out_feat = prepare_params(params)

    out = jax.block_until_ready(fake_ddp_forward(x, flat_params, out_feat))
    ref = reference_forward(x, params)
    assert out.shape == (B, OUT_FEAT)
    assert jnp.allclose(out, ref, atol=1e-5, rtol=1e-5), "mismatch (small batch)"

    # Also exercise the batched path: grid > 1, pipelined 256-row batch tiles.
    B2 = 512
    key, kx2 = jax.random.split(key)
    x2 = jax.random.normal(kx2, (B2, IN_FEAT), dtype=jnp.float32)
    out2 = jax.block_until_ready(fake_ddp_forward(x2, flat_params, out_feat))
    ref2 = reference_forward(x2, params)
    assert out2.shape == (B2, OUT_FEAT)
    assert jnp.allclose(out2, ref2, atol=1e-4, rtol=1e-4), "mismatch (batched)"

    print("KERNEL_OK")
</pallas_src>

<mosaic_0001>
module attributes {stable_mosaic.version = 11 : i64} {
  func.func @fake_ddp_mlp_kernel(%arg0: i32, %arg1: memref<8x32xf32, #tpu.memory_space<vmem>>, %arg2: memref<32x128xf32, #tpu.memory_space<vmem>>, %arg3: memref<1x128xf32, #tpu.memory_space<vmem>>, %arg4: memref<128x128xf32, #tpu.memory_space<vmem>>, %arg5: memref<1x128xf32, #tpu.memory_space<vmem>>, %arg6: memref<128x128xf32, #tpu.memory_space<vmem>>, %arg7: memref<1x128xf32, #tpu.memory_space<vmem>>, %arg8: memref<128x128xf32, #tpu.memory_space<vmem>>, %arg9: memref<1x128xf32, #tpu.memory_space<vmem>>, %arg10: memref<8x128xf32, #tpu.memory_space<vmem>>) attributes {dimension_semantics = [#tpu.dimension_semantics<parallel>], iteration_bounds = array<i64: 1>, scalar_prefetch = 0 : i64, scratch_operands = 0 : i64, tpu.core_type = #tpu.core_type<tc>, window_params = [{transform_indices = @transform_0, window_bounds = array<i64: 8, 32>}, {pipeline_mode = #tpu.pipeline_mode<synchronous>, transform_indices = @transform_1, window_bounds = array<i64: 32, 128>}, {pipeline_mode = #tpu.pipeline_mode<synchronous>, transform_indices = @transform_2, window_bounds = array<i64: 1, 128>}, {pipeline_mode = #tpu.pipeline_mode<synchronous>, transform_indices = @transform_3, window_bounds = array<i64: 128, 128>}, {pipeline_mode = #tpu.pipeline_mode<synchronous>, transform_indices = @transform_4, window_bounds = array<i64: 1, 128>}, {pipeline_mode = #tpu.pipeline_mode<synchronous>, transform_indices = @transform_5, window_bounds = array<i64: 128, 128>}, {pipeline_mode = #tpu.pipeline_mode<synchronous>, transform_indices = @transform_6, window_bounds = array<i64: 1, 128>}, {pipeline_mode = #tpu.pipeline_mode<synchronous>, transform_indices = @transform_7, window_bounds = array<i64: 128, 128>}, {pipeline_mode = #tpu.pipeline_mode<synchronous>, transform_indices = @transform_8, window_bounds = array<i64: 1, 128>}, {transform_indices = @transform_9, window_bounds = array<i64: 8, 128>}]} {
    %c0 = arith.constant 0 : index
    %c0_0 = arith.constant 0 : index
    %0 = vector.load %arg1[%c0, %c0_0] : memref<8x32xf32, #tpu.memory_space<vmem>>, vector<8x32xf32>
    %c0_1 = arith.constant 0 : index
    %c0_2 = arith.constant 0 : index
    %1 = vector.load %arg2[%c0_1, %c0_2] : memref<32x128xf32, #tpu.memory_space<vmem>>, vector<32x128xf32>
    %cst = arith.constant dense<0.000000e+00> : vector<8x128xf32>
    %2 = tpu.matmul %0, %1, %cst {dimension_numbers = #tpu.dot_dimension_numbers<[1], [0], [0], [1], [0, 0, 1, 1], [], []>} : vector<8x32xf32>, vector<32x128xf32>, vector<8x128xf32> -> vector<8x128xf32>
    %c0_3 = arith.constant 0 : index
    %c0_4 = arith.constant 0 : index
    %3 = vector.load %arg3[%c0_3, %c0_4] : memref<1x128xf32, #tpu.memory_space<vmem>>, vector<1x128xf32>
    %4 = vector.broadcast %3 : vector<1x128xf32> to vector<8x128xf32>
    %5 = arith.addf %2, %4 : vector<8x128xf32>
    %cst_5 = arith.constant 0.000000e+00 : f32
    %6 = vector.broadcast %cst_5 : f32 to vector<8x128xf32>
    %7 = arith.maximumf %5, %6 : vector<8x128xf32>
    %c0_6 = arith.constant 0 : index
    %c0_7 = arith.constant 0 : index
    %8 = vector.load %arg4[%c0_6, %c0_7] : memref<128x128xf32, #tpu.memory_space<vmem>>, vector<128x128xf32>
    %cst_8 = arith.constant dense<0.000000e+00> : vector<8x128xf32>
    %9 = tpu.matmul %7, %8, %cst_8 {dimension_numbers = #tpu.dot_dimension_numbers<[1], [0], [0], [1], [0, 0, 1, 1], [], []>} : vector<8x128xf32>, vector<128x128xf32>, vector<8x128xf32> -> vector<8x128xf32>
    %c0_9 = arith.constant 0 : index
    %c0_10 = arith.constant 0 : index
    %10 = vector.load %arg5[%c0_9, %c0_10] : memref<1x128xf32, #tpu.memory_space<vmem>>, vector<1x128xf32>
    %11 = vector.broadcast %10 : vector<1x128xf32> to vector<8x128xf32>
    %12 = arith.addf %9, %11 : vector<8x128xf32>
    %cst_11 = arith.constant 0.000000e+00 : f32
    %13 = vector.broadcast %cst_11 : f32 to vector<8x128xf32>
    %14 = arith.maximumf %12, %13 : vector<8x128xf32>
    %c0_12 = arith.constant 0 : index
    %c0_13 = arith.constant 0 : index
    %15 = vector.load %arg6[%c0_12, %c0_13] : memref<128x128xf32, #tpu.memory_space<vmem>>, vector<128x128xf32>
    %cst_14 = arith.constant dense<0.000000e+00> : vector<8x128xf32>
    %16 = tpu.matmul %14, %15, %cst_14 {dimension_numbers = #tpu.dot_dimension_numbers<[1], [0], [0], [1], [0, 0, 1, 1], [], []>} : vector<8x128xf32>, vector<128x128xf32>, vector<8x128xf32> -> vector<8x128xf32>
    %c0_15 = arith.constant 0 : index
    %c0_16 = arith.constant 0 : index
    %17 = vector.load %arg7[%c0_15, %c0_16] : memref<1x128xf32, #tpu.memory_space<vmem>>, vector<1x128xf32>
    %18 = vector.broadcast %17 : vector<1x128xf32> to vector<8x128xf32>
    %19 = arith.addf %16, %18 : vector<8x128xf32>
    %cst_17 = arith.constant 0.000000e+00 : f32
    %20 = vector.broadcast %cst_17 : f32 to vector<8x128xf32>
    %21 = arith.maximumf %19, %20 : vector<8x128xf32>
    %c0_18 = arith.constant 0 : index
    %c0_19 = arith.constant 0 : index
    %22 = vector.load %arg8[%c0_18, %c0_19] : memref<128x128xf32, #tpu.memory_space<vmem>>, vector<128x128xf32>
    %cst_20 = arith.constant dense<0.000000e+00> : vector<8x128xf32>
    %23 = tpu.matmul %21, %22, %cst_20 {dimension_numbers = #tpu.dot_dimension_numbers<[1], [0], [0], [1], [0, 0, 1, 1], [], []>} : vector<8x128xf32>, vector<128x128xf32>, vector<8x128xf32> -> vector<8x128xf32>
    %c0_21 = arith.constant 0 : index
    %c0_22 = arith.constant 0 : index
    %24 = vector.load %arg9[%c0_21, %c0_22] : memref<1x128xf32, #tpu.memory_space<vmem>>, vector<1x128xf32>
    %25 = vector.broadcast %24 : vector<1x128xf32> to vector<8x128xf32>
    %26 = arith.addf %23, %25 : vector<8x128xf32>
    %cst_23 = arith.constant 0.000000e+00 : f32
    %27 = vector.broadcast %cst_23 : f32 to vector<8x128xf32>
    %28 = arith.maximumf %26, %27 : vector<8x128xf32>
    %c0_24 = arith.constant 0 : index
    %c0_25 = arith.constant 0 : index
    %29 = vector.load %arg10[%c0_24, %c0_25] : memref<8x128xf32, #tpu.memory_space<vmem>>, vector<8x128xf32>
    tpu.vector_store %arg10[%c0_24, %c0_25], %28 {strides = array<i32>} : memref<8x128xf32, #tpu.memory_space<vmem>>, vector<8x128xf32>,
    return
  }
  func.func @transform_0(%arg0: i32) -> (i32, i32) {
    %c0_i32 = arith.constant 0 : i32
    %c0_i32_0 = arith.constant 0 : i32
    return %arg0, %c0_i32 : i32, i32
  }
  func.func @transform_1(%arg0: i32) -> (i32, i32) {
    %c0_i32 = arith.constant 0 : i32
    %c0_i32_0 = arith.constant 0 : i32
    %c0_i32_1 = arith.constant 0 : i32
    return %c0_i32, %c0_i32_0 : i32, i32
  }
  func.func @transform_2(%arg0: i32) -> (i32, i32) {
    %c0_i32 = arith.constant 0 : i32
    %c0_i32_0 = arith.constant 0 : i32
    %c0_i32_1 = arith.constant 0 : i32
    return %c0_i32, %c0_i32_0 : i32, i32
  }
  func.func @transform_3(%arg0: i32) -> (i32, i32) {
    %c0_i32 = arith.constant 0 : i32
    %c0_i32_0 = arith.constant 0 : i32
    %c0_i32_1 = arith.constant 0 : i32
    return %c0_i32, %c0_i32_0 : i32, i32
  }
  func.func @transform_4(%arg0: i32) -> (i32, i32) {
    %c0_i32 = arith.constant 0 : i32
    %c0_i32_0 = arith.constant 0 : i32
    %c0_i32_1 = arith.constant 0 : i32
    return %c0_i32, %c0_i32_0 : i32, i32
  }
  func.func @transform_5(%arg0: i32) -> (i32, i32) {
    %c0_i32 = arith.constant 0 : i32
    %c0_i32_0 = arith.constant 0 : i32
    %c0_i32_1 = arith.constant 0 : i32
    return %c0_i32, %c0_i32_0 : i32, i32
  }
  func.func @transform_6(%arg0: i32) -> (i32, i32) {
    %c0_i32 = arith.constant 0 : i32
    %c0_i32_0 = arith.constant 0 : i32
    %c0_i32_1 = arith.constant 0 : i32
    return %c0_i32, %c0_i32_0 : i32, i32
  }
  func.func @transform_7(%arg0: i32) -> (i32, i32) {
    %c0_i32 = arith.constant 0 : i32
    %c0_i32_0 = arith.constant 0 : i32
    %c0_i32_1 = arith.constant 0 : i32
    return %c0_i32, %c0_i32_0 : i32, i32
  }
  func.func @transform_8(%arg0: i32) -> (i32, i32) {
    %c0_i32 = arith.constant 0 : i32
    %c0_i32_0 = arith.constant 0 : i32
    %c0_i32_1 = arith.constant 0 : i32
    return %c0_i32, %c0_i32_0 : i32, i32
  }
  func.func @transform_9(%arg0: i32) -> (i32, i32) {
    %c0_i32 = arith.constant 0 : i32
    %c0_i32_0 = arith.constant 0 : i32
    return %arg0, %c0_i32 : i32, i32
  }
}

</mosaic_0001>

<bundles_post_ra>
// kernel: tpu_custom_call.1
= control target key start
LH: loop header
LB: loop body
LE: loop exit
PB: predicated region body
PF: predicated region fallthrough
CT: control target
= control target key end

     0   :  { %14 = vsyncpa [#allocation3], 0  ;;  %s963_s0 = inlined_call_operand.hbm [shape: f32[8,32], index: 0, kind: input, shape index: {}]   ;;  %s964_s1 = inlined_call_operand.hbm [shape: f32[32,128], index: 1, kind: input, shape index: {}]   ;;  %s965_s2 = inlined_call_operand.vmem [shape: f32[1,128], index: 2, kind: input, shape index: {}]   ;;  %s966_s3 = inlined_call_operand.hbm [shape: f32[128,128], index: 3, kind: input, shape index: {}]   ;;  %s967_s4 = inlined_call_operand.vmem [shape: f32[1,128], index: 4, kind: input, shape index: {}]   ;;  %s968_s5 = inlined_call_operand.hbm [shape: f32[128,128], index: 5, kind: input, shape index: {}]   ;;  %s969_s6 = inlined_call_operand.vmem [shape: f32[1,128], index: 6, kind: input, shape index: {}]   ;;  %s970_s7 = inlined_call_operand.hbm [shape: f32[128,128], index: 7, kind: input, shape index: {}]   ;;  %s971_s8 = inlined_call_operand.vmem [shape: f32[1,128], index: 8, kind: input, shape index: {}]   ;;  %s972_s9 = inlined_call_operand.hbm [shape: f32[8,128], index: 9, kind: output, shape index: {}]  }
   0x1   :  { %15 = vsyncpa [#allocation6], 0 }
   0x2   :  { %16 = vsyncpa [#allocation9], 0 }
   0x3   :  { %17 = vsyncpa [#allocation4], 0  ;;  %s801_s30 = smov [#allocation5]  }
   0x4   :  { %s33_s10 = sshll.u32 %s801_s30, 4  ;;  %s34_s10 = int_to_ptr.vmem [resolvable:$true] %s33_s10 }
   0x5   :  { %s681_s11 = scalar_lea.vmem %s34_s10, 512  ;;  %p686_p1 = scmp.lt.s32.totalorder %s34_s10, %s34_s10 }
   0x6   :  { %p682_p0 = scmp.ne.s32.totalorder %s34_s10, %s681_s11  ;;  %p687_p2 = scmp.lt.s32.totalorder %s681_s11, %s681_s11 }
   0x8   :  { %p688_p3 = por %p687_p2, %p686_p1 }
   0xa   :  { %p689_p4 = pnand %p688_p3, %p682_p0 }
   0xc   :  { %692 = shalt.err (!%p689_p4)
}
   0xd   :  { %s802_s12 = smov 128   ;;  %s803_s13 = smov 8  }
   0xe   :  { %39 = dma.hbm_to_vmem [thread:$0]  %s964_s1, 512, %s34_s10, [#allocation6], %s802_s12, %s802_s12, %s803_s13  }
   0xf   :  { %s804_s16 = smov [#allocation8]   ;;  %s805_s18 = smov [#allocation2]  }
  0x10   :  { %s61_s17 = sshll.u32 %s804_s16, 4  ;;  %s24_s19 = sshll.u32 %s805_s18, 4  ;;  %s62_s17 = int_to_ptr.vmem [resolvable:$true] %s61_s17  ;;  %s25_s19 = int_to_ptr.vmem [resolvable:$true] %s24_s19 }
  0x11   :  { %s701_s20 = scalar_lea.vmem %s62_s17, 2048  ;;  %p706_p6 = scmp.lt.s32.totalorder %s62_s17, %s62_s17 }
  0x12   :  { %p702_p5 = scmp.ne.s32.totalorder %s62_s17, %s701_s20  ;;  %p707_p7 = scmp.lt.s32.totalorder %s701_s20, %s701_s20 }
  0x14   :  { %p708_p8 = por %p707_p7, %p706_p6 }
  0x16   :  { %p709_p9 = pnand %p708_p8, %p702_p5 }
  0x18   :  { %712 = shalt.err (!%p709_p9)
}
  0x19   :  { %67 = dma.hbm_to_vmem [thread:$0]  %s968_s5, 2048, %s62_s17, [#allocation9], %s802_s12, %s802_s12, %s803_s13  }
  0x1a   :  { %s721_s1 = scalar_lea.vmem %s25_s19, 128  ;;  %p726_p11 = scmp.lt.s32.totalorder %s25_s19, %s25_s19 }
  0x1b   :  { %p722_p10 = scmp.ne.s32.totalorder %s25_s19, %s721_s1  ;;  %p727_p12 = scmp.lt.s32.totalorder %s721_s1, %s721_s1 }
  0x1d   :  { %p728_p13 = por %p727_p12, %p726_p11 }
  0x1f   :  { %p729_p0 = pnand %p728_p13, %p722_p10 }
  0x21   :  { %732 = shalt.err (!%p729_p0)
}
  0x22   :  { %27 = dma.hbm_to_vmem [thread:$0]  %s963_s0, 128, %s25_s19, [#allocation3]  }
  0x23   :  { %s806_s25 = smov [#allocation7]   ;;  %s807_s27 = smov [#allocation10]  }
  0x24   :  { %s47_s26 = sshll.u32 %s806_s25, 4  ;;  %s75_s28 = sshll.u32 %s807_s27, 4  ;;  %s48_s26 = int_to_ptr.vmem [resolvable:$true] %s47_s26  ;;  %s76_s28 = int_to_ptr.vmem [resolvable:$true] %s75_s28 }
  0x25   :  { %s741_s29 = scalar_lea.vmem %s48_s26, 2048  ;;  %p746_p2 = scmp.lt.s32.totalorder %s48_s26, %s48_s26 }
  0x26   :  { %p742_p1 = scmp.ne.s32.totalorder %s48_s26, %s741_s29  ;;  %p747_p3 = scmp.lt.s32.totalorder %s741_s29, %s741_s29 }
  0x28   :  { %p748_p4 = por %p747_p3, %p746_p2 }
  0x2a   :  { %p749_p5 = pnand %p748_p4, %p742_p1 }
  0x2c   :  { %752 = shalt.err (!%p749_p5)
}
  0x2d   :  { %53 = dma.hbm_to_vmem [thread:$0]  %s966_s3, 2048, %s48_s26, [#allocation6], %s802_s12, %s802_s12, %s803_s13  }
  0x2e   :  { %s761_s0 = scalar_lea.vmem %s76_s28, 2048  ;;  %p766_p7 = scmp.lt.s32.totalorder %s76_s28, %s76_s28 }
  0x2f   :  { %p762_p6 = scmp.ne.s32.totalorder %s76_s28, %s761_s0  ;;  %p767_p8 = scmp.lt.s32.totalorder %s761_s0, %s761_s0 }
  0x31   :  { %p768_p9 = por %p767_p8, %p766_p7 }
  0x33   :  { %p769_p10 = pnand %p768_p9, %p762_p6 }
  0x35   :  { %772 = shalt.err (!%p769_p10)
}
  0x36   :  { %81 = dma.hbm_to_vmem [thread:$0]  %s970_s7, 2048, %s76_s28, [#allocation9], %s802_s12, %s802_s12, %s803_s13  }
  0x37   :  { %793 = dma.done.wait [#allocation3], 128  }
  0x38   :  { %794 = vsyncadd [#allocation3], 4294967168 }
  0x39   :  { %795 = dma.done.wait [#allocation6], 2560  }
  0x3a   :  { %796 = vsyncadd [#allocation6], 4294964736 }
  0x3b   :  { %797 = dma.done.wait [#allocation9], 4096  }
  0x3c   :  { %798 = vsyncadd [#allocation9], 4294963200  ;;  %v808_v0 = vmov 0.0   ;;  %vm809_vm0 = vmmov 0   ;;  %v103_v1 = vld [vmem:[#allocation5 + $0x18] sm:$0xff]  ;;  %v102_v2 = vld [vmem:[#allocation5 + $0x10] sm:$0xff] }
  0x3d   :  { %547 = vmatprep.subr.mxu0 %v808_v0  ;;  %555 = vmatprep.mubr.msk.f32.mxu0 %vm809_vm0, %v808_v0  ;;  %v201_v3 = vld [vmem:[#allocation7 + $0x78] sm:$0xff]  ;;  %v101_v4 = vld [vmem:[#allocation5 + $0x8] sm:$0xff]  ;;  %v200_v5 = vld [vmem:[#allocation7 + $0x70] sm:$0xff]  ;;  %vm111_vm1 = vcmask 261120   ;;  %s810_s16 = smov [#allocation11]  }
  0x3e   :  { %558 = vmatprep.subr.mxu1 %v808_v0  ;;  %590 = vmatprep.mubr.msk.f32.mxu1 %vm809_vm0, %v808_v0  ;;  %v199_v6 = vld [vmem:[#allocation7 + $0x68] sm:$0xff]  ;;  %v100_v7 = vld [vmem:[#allocation5] sm:$0xff]  ;;  %v99_v8 = vld [vmem:[#allocation2] sm:$0xff]  ;;  %s475_s17 = sshll.u32 %s810_s16, 4  ;;  %s476_s17 = int_to_ptr.vmem [resolvable:$true] %s475_s17 }
  0x3f   :  { %548 = vmatpush3.msra.mxu0 %v103_v1  ;;  %559 = vmatpush3.msra.mxu1 %v201_v3  ;;  %v198_v9 = vld [vmem:[#allocation7 + $0x60] sm:$0xff]  ;;  %v197_v10 = vld [vmem:[#allocation7 + $0x58] sm:$0xff]  ;;  %v196_v11 = vld [vmem:[#allocation7 + $0x50] sm:$0xff]  ;;  %s773_s18 = scalar_lea.vmem %s476_s17, 128  ;;  %p778_p12 = scmp.lt.s32.totalorder %s476_s17, %s476_s17 }
  0x40   :  { %549 = vmatprep.subr.mxu0 %v808_v0  ;;  %560 = vmatprep.subr.mxu1 %v808_v0  ;;  %v195_v12 = vld [vmem:[#allocation7 + $0x48] sm:$0xff]  ;;  %v194_v13 = vld [vmem:[#allocation7 + $0x40] sm:$0xff]  ;;  %v193_v14 = vld [vmem:[#allocation7 + $0x38] sm:$0xff]  ;;  %p774_p11 = scmp.ne.s32.totalorder %s476_s17, %s773_s18  ;;  %p779_p13 = scmp.lt.s32.totalorder %s773_s18, %s773_s18 }
  0x41   :  { %550 = vmatpush3.msra.mxu0 %v102_v2  ;;  %561 = vmatpush3.msra.mxu1 %v200_v5  ;;  %v192_v15 = vld [vmem:[#allocation7 + $0x30] sm:$0xff]  ;;  %v191_v16 = vld [vmem:[#allocation7 + $0x28] sm:$0xff]  ;;  %v190_v17 = vld [vmem:[#allocation7 + $0x20] sm:$0xff] }
  0x42   :  { %551 = vmatprep.subr.mxu0 %v808_v0  ;;  %562 = vmatprep.subr.mxu1 %v808_v0  ;;  %v189_v18 = vld [vmem:[#allocation7 + $0x18] sm:$0xff]  ;;  %v188_v19 = vld [vmem:[#allocation7 + $0x10] sm:$0xff]  ;;  %v187_v20 = vld [vmem:[#allocation7 + $0x8] sm:$0xff]  ;;  %p780_p0 = por %p779_p13, %p778_p12 }
  0x43   :  { %552 = vmatpush3.msra.mxu0 %v101_v4  ;;  %563 = vmatpush3.msra.mxu1 %v199_v6  ;;  %v186_v21 = vld [vmem:[#allocation7] sm:$0xff]  ;;  %v295_v22 = vld [vmem:[#allocation8 + $0x78] sm:$0xff]  ;;  %v294_v23 = vld [vmem:[#allocation8 + $0x70] sm:$0xff] }
  0x44   :  { %553 = vmatprep.subr.mxu0 %v808_v0  ;;  %564 = vmatprep.subr.mxu1 %v808_v0  ;;  %v293_v24 = vld [vmem:[#allocation8 + $0x68] sm:$0xff]  ;;  %v292_v25 = vld [vmem:[#allocation8 + $0x60] sm:$0xff]  ;;  %v291_v26 = vld [vmem:[#allocation8 + $0x58] sm:$0xff]  ;;  %p781_p1 = pnand %p780_p0, %p774_p11 }
  0x45   :  { %554 = vmatpush3.msra.mxu0 %v100_v7  ;;  %565 = vmatpush3.msra.mxu1 %v198_v9  ;;  %v290_v27 = vld [vmem:[#allocation8 + $0x50] sm:$0xff]  ;;  %v289_v28 = vld [vmem:[#allocation8 + $0x48] sm:$0xff]  ;;  %v288_v29 = vld [vmem:[#allocation8 + $0x40] sm:$0xff] }
  0x46   :  { %556 = vmatmul.mubr.msk.f32.vlgmr.msra.gmra.mxu0 %vm111_vm1, %v99_v8  ;;  %566 = vmatprep.subr.mxu1 %v808_v0  ;;  %v287_v30 = vld [vmem:[#allocation8 + $0x38] sm:$0xff]  ;;  %v286_v31 = vld [vmem:[#allocation8 + $0x30] sm:$0xff]  ;;  %v285_v32 = vld [vmem:[#allocation8 + $0x28] sm:$0xff] }
  0x47   :  { %593 = vmatprep.subr.mxu0 %v808_v0  ;;  %567 = vmatpush3.msra.mxu1 %v197_v10  ;;  %v284_v33 = vld [vmem:[#allocation8 + $0x20] sm:$0xff]  ;;  %v283_v34 = vld [vmem:[#allocation8 + $0x18] sm:$0xff]  ;;  %v282_v40 = vld [vmem:[#allocation8 + $0x10] sm:$0xff] }
  0x48   :  { %625 = vmatprep.mubr.msk.f32.mxu0 %vm809_vm0, %v808_v0  ;;  %568 = vmatprep.subr.mxu1 %v808_v0  ;;  %v486_v35 = vld [vmem:[%s965_s2] ss:$0 sm:$0xff]  ;;  %v281_v41 = vld [vmem:[#allocation8 + $0x8] sm:$0xff]  ;;  %v280_v42 = vld [vmem:[#allocation8] sm:$0xff] }
  0x49   :  { %569 = vmatpush3.msra.mxu1 %v196_v11  ;;  %594 = vmatpush3.msra.mxu0 %v295_v22  ;;  %v389_v43 = vld [vmem:[#allocation10 + $0x78] sm:$0xff]  ;;  %v388_v44 = vld [vmem:[#allocation10 + $0x70] sm:$0xff]  ;;  %v387_v45 = vld [vmem:[#allocation10 + $0x68] sm:$0xff] }
  0x4a   :  { %570 = vmatprep.subr.mxu1 %v808_v0  ;;  %595 = vmatprep.subr.mxu0 %v808_v0  ;;  %v386_v46 = vld [vmem:[#allocation10 + $0x60] sm:$0xff]  ;;  %v385_v47 = vld [vmem:[#allocation10 + $0x58] sm:$0xff]  ;;  %v384_v48 = vld [vmem:[#allocation10 + $0x50] sm:$0xff] }
  0x4b   :  { %571 = vmatpush3.msra.mxu1 %v195_v12  ;;  %596 = vmatpush3.msra.mxu0 %v294_v23  ;;  %v383_v49 = vld [vmem:[#allocation10 + $0x48] sm:$0xff]  ;;  %v382_v50 = vld [vmem:[#allocation10 + $0x40] sm:$0xff]  ;;  %v381_v51 = vld [vmem:[#allocation10 + $0x38] sm:$0xff] }
  0x4c   :  { %572 = vmatprep.subr.mxu1 %v808_v0  ;;  %597 = vmatprep.subr.mxu0 %v808_v0  ;;  %v380_v52 = vld [vmem:[#allocation10 + $0x30] sm:$0xff]  ;;  %v379_v53 = vld [vmem:[#allocation10 + $0x28] sm:$0xff]  ;;  %v378_v54 = vld [vmem:[#allocation10 + $0x20] sm:$0xff] }
  0x4d   :  { %573 = vmatpush3.msra.mxu1 %v194_v13  ;;  %598 = vmatpush3.msra.mxu0 %v293_v24  ;;  %v377_v55 = vld [vmem:[#allocation10 + $0x18] sm:$0xff]  ;;  %v376_v61 = vld [vmem:[#allocation10 + $0x10] sm:$0xff]  ;;  %v375_v62 = vld [vmem:[#allocation10 + $0x8] sm:$0xff] }
  0x4e   :  { %574 = vmatprep.subr.mxu1 %v808_v0  ;;  %599 = vmatprep.subr.mxu0 %v808_v0  ;;  %v488_v56 = vld [vmem:[%s967_s4] ss:$0 sm:$0xff]  ;;  %v374_v63 = vld [vmem:[#allocation10] sm:$0xff] }
  0x4f   :  { %575 = vmatpush3.msra.mxu1 %v193_v14  ;;  %600 = vmatpush3.msra.mxu0 %v292_v25  ;;  %v489_v1 = vld [vmem:[%s969_s6] ss:$0 sm:$0xff] }
  0x50   :  { %576 = vmatprep.subr.mxu1 %v808_v0  ;;  %601 = vmatprep.subr.mxu0 %v808_v0  ;;  %v490_v6 = vld [vmem:[%s971_s8] ss:$0 sm:$0xff] }
  0x51   :  { %577 = vmatpush3.msra.mxu1 %v192_v15  ;;  %602 = vmatpush3.msra.mxu0 %v291_v26 }
  0x52   :  { %578 = vmatprep.subr.mxu1 %v808_v0  ;;  %603 = vmatprep.subr.mxu0 %v808_v0 }
  0x53   :  { %579 = vmatpush3.msra.mxu1 %v191_v16  ;;  %604 = vmatpush3.msra.mxu0 %v290_v27 }
  0x54   :  { %580 = vmatprep.subr.mxu1 %v808_v0  ;;  %605 = vmatprep.subr.mxu0 %v808_v0 }
  0x55   :  { %581 = vmatpush3.msra.mxu1 %v190_v17  ;;  %606 = vmatpush3.msra.mxu0 %v289_v28 }
  0x56   :  { %582 = vmatprep.subr.mxu1 %v808_v0  ;;  %607 = vmatprep.subr.mxu0 %v808_v0 }
  0x57   :  { %583 = vmatpush3.msra.mxu1 %v189_v18  ;;  %608 = vmatpush3.msra.mxu0 %v288_v29 }
  0x58   :  { %584 = vmatprep.subr.mxu1 %v808_v0  ;;  %609 = vmatprep.subr.mxu0 %v808_v0 }
  0x59   :  { %585 = vmatpush3.msra.mxu1 %v188_v19  ;;  %610 = vmatpush3.msra.mxu0 %v287_v30 }
  0x5a   :  { %586 = vmatprep.subr.mxu1 %v808_v0  ;;  %611 = vmatprep.subr.mxu0 %v808_v0 }
  0x5b   :  { %587 = vmatpush3.msra.mxu1 %v187_v20  ;;  %612 = vmatpush3.msra.mxu0 %v286_v31 }
  0x5c   :  { %588 = vmatprep.subr.mxu1 %v808_v0  ;;  %613 = vmatprep.subr.mxu0 %v808_v0 }
  0x5d   :  { %589 = vmatpush3.msra.mxu1 %v186_v21  ;;  %614 = vmatpush3.msra.mxu0 %v285_v32 }
  0x5e   :  { %628 = vmatprep.subr.mxu1 %v808_v0  ;;  %615 = vmatprep.subr.mxu0 %v808_v0 }
  0x5f   :  { %616 = vmatpush3.msra.mxu0 %v284_v33 }
  0x60   :  { %617 = vmatprep.subr.mxu0 %v808_v0 }
  0x61   :  { %618 = vmatpush3.msra.mxu0 %v283_v34 }
  0x62   :  { %619 = vmatprep.subr.mxu0 %v808_v0 }
  0x63   :  { %620 = vmatpush3.msra.mxu0 %v282_v40 }
  0x64   :  { %621 = vmatprep.subr.mxu0 %v808_v0 }
  0x65   :  { %622 = vmatpush3.msra.mxu0 %v281_v41 }
  0x66   :  { %623 = vmatprep.subr.mxu0 %v808_v0 }
  0x67   :  { %624 = vmatpush3.msra.mxu0 %v280_v42 }
 0x106   :  { %v181_v36 = vpop.f32.mrf.mxu0 }
 0x107   :  { %v182_v37 = vadd.f32 %v486_v35, %v181_v36 }
 0x108   :  { %v557_v38 = vpop.f32.mrf.mxu0 }
 0x109   :  { %v185_v39 = vmax.f32 %v182_v37, 0.0 }
 0x10b   :  { %591 = vmatmul.mubr.f32.vlgmr.msra.gmra.mxu1 %v185_v39 }
 0x10c   :  { %660 = vmatprep.mubr.msk.f32.mxu1 %vm809_vm0, %v808_v0  ;;  %629 = vmatpush3.msra.mxu1 %v389_v43 }
 0x10d   :  { %630 = vmatprep.subr.mxu1 %v808_v0 }
 0x10e   :  { %631 = vmatpush3.msra.mxu1 %v388_v44 }
 0x10f   :  { %632 = vmatprep.subr.mxu1 %v808_v0 }
 0x110   :  { %633 = vmatpush3.msra.mxu1 %v387_v45 }
 0x111   :  { %634 = vmatprep.subr.mxu1 %v808_v0 }
 0x112   :  { %635 = vmatpush3.msra.mxu1 %v386_v46 }
 0x113   :  { %636 = vmatprep.subr.mxu1 %v808_v0 }
 0x114   :  { %637 = vmatpush3.msra.mxu1 %v385_v47 }
 0x115   :  { %638 = vmatprep.subr.mxu1 %v808_v0 }
 0x116   :  { %639 = vmatpush3.msra.mxu1 %v384_v48 }
 0x117   :  { %640 = vmatprep.subr.mxu1 %v808_v0 }
 0x118   :  { %641 = vmatpush3.msra.mxu1 %v383_v49 }
 0x119   :  { %642 = vmatprep.subr.mxu1 %v808_v0 }
 0x11a   :  { %643 = vmatpush3.msra.mxu1 %v382_v50 }
 0x11b   :  { %644 = vmatprep.subr.mxu1 %v808_v0 }
 0x11c   :  { %645 = vmatpush3.msra.mxu1 %v381_v51 }
 0x11d   :  { %646 = vmatprep.subr.mxu1 %v808_v0 }
 0x11e   :  { %647 = vmatpush3.msra.mxu1 %v380_v52 }
 0x11f   :  { %648 = vmatprep.subr.mxu1 %v808_v0 }
 0x120   :  { %649 = vmatpush3.msra.mxu1 %v379_v53 }
 0x121   :  { %650 = vmatprep.subr.mxu1 %v808_v0 }
 0x122   :  { %651 = vmatpush3.msra.mxu1 %v378_v54 }
 0x123   :  { %652 = vmatprep.subr.mxu1 %v808_v0 }
 0x124   :  { %653 = vmatpush3.msra.mxu1 %v377_v55 }
 0x125   :  { %654 = vmatprep.subr.mxu1 %v808_v0 }
 0x126   :  { %655 = vmatpush3.msra.mxu1 %v376_v61 }
 0x127   :  { %656 = vmatprep.subr.mxu1 %v808_v0 }
 0x128   :  { %657 = vmatpush3.msra.mxu1 %v375_v62 }
 0x129   :  { %658 = vmatprep.subr.mxu1 %v808_v0 }
 0x12a   :  { %659 = vmatpush3.msra.mxu1 %v374_v63 }
 0x1cb   :  { %v275_v57 = vpop.f32.mrf.mxu1 }
 0x1cc   :  { %v276_v58 = vadd.f32 %v488_v56, %v275_v57 }
 0x1cd   :  { %v592_v59 = vpop.f32.mrf.mxu1 }
 0x1ce   :  { %v279_v60 = vmax.f32 %v276_v58, 0.0 }
 0x1d0   :  { %626 = vmatmul.mubr.f32.vlgmr.msra.gmra.mxu0 %v279_v60 }
 0x290   :  { %v369_v2 = vpop.f32.mrf.mxu0 }
 0x291   :  { %v370_v3 = vadd.f32 %v489_v1, %v369_v2 }
 0x292   :  { %v627_v4 = vpop.f32.mrf.mxu0 }
 0x293   :  { %v373_v5 = vmax.f32 %v370_v3, 0.0 }
 0x295   :  { %661 = vmatmul.mubr.f32.vlgmr.msra.gmra.mxu1 %v373_v5 }
 0x355   :  { %v463_v7 = vpop.f32.mrf.mxu1 }
 0x356   :  { %v464_v8 = vadd.f32 %v490_v6, %v463_v7 }
 0x357   :  { %v662_v0 = vpop.f32.mrf.mxu1 }
 0x358   :  { %v467_v9 = vmax.f32 %v464_v8, 0.0 }
 0x35a   :  { %468 = vst [vmem:[#allocation11] sm:$0xff] %v467_v9 }
 0x35b   :  { %784 = shalt.err (!%p781_p1)
}
 0x35c   :  { %478 = dma.vmem_to_hbm [thread:$0]  %s476_s17, 128, %s972_s9, [#allocation4]  }
 0x35d   :  { %799 = dma.done.wait [#allocation4], 128  }
 0x35e   :  { %800 = vsyncadd [#allocation4], 4294967168 }
 0x35f   :  { %482 = vsyncpa [#allocation3], 1 }
 0x360   :  { %483 = vsyncpa [#allocation6], 1 }
 0x361   :  { %484 = vsyncpa [#allocation9], 1 }
 0x362   :  { %485 = vsyncpa [#allocation4], 1 }

</bundles_post_ra>
